<compile_context>
chip_gen: v6e
topology: v6e:2x2x1
jax: 0.10.0
libtpu: 0.0.40
codegen_flags: <defaults>
</compile_context>

<pallas_src>
import jax
import jax.numpy as jnp
from jax.experimental import pallas as pl
from jax.experimental.pallas import tpu as pltpu


def _round_up(x, m):
    return ((x + m - 1) // m) * m


def _vmem_limit_bytes():
    """~75% of physical VMEM (48 MiB on v7x, 96 MiB on v5e/v6e), safe fallback."""
    cap = 64 * 1024 * 1024
    try:
        info = pltpu.get_tpu_info()
        cap = int(getattr(info, "vmem_capacity_bytes", cap))
    except Exception:
        pass
    return max(32 * 1024 * 1024, min(cap * 3 // 4, 96 * 1024 * 1024))


def _choose_tm(BT):
    """Row tile: >=2 tiles when BT allows (v7x megacore), multiple of 8, <=256."""
    # NOTE: on v5e a 128-row tile matches the 4x128x128 MXU just as well; 256
    # is kept as the portable default since the kernel is DMA-bound anyway.
    if BT >= 512:
        return 256
    tm = _round_up(max((BT + 1) // 2, 1), 8)
    return max(8, min(tm, 256))


def _choose_tk(K, C_pad, budget, tm=256):
    """Reduction tile for the (rare) K-tiled fallback path; large to amortize
    the ~0.35us/step grid overhead while keeping double-buffered blocks small."""
    kp128 = _round_up(K, 128)
    for tk in (4096, 2048, 1024, 512, 256, 128):
        if tk > kp128:
            continue
        need = (2 * tm * tk * 4          # x f32 tiles, double-buffered
                + 2 * tk * C_pad * 2     # weight bf16 tiles, double-buffered
                + 2 * C_pad * 4          # bias
                + 2 * tm * C_pad * 4)    # output f32 blocks
        if need <= int(budget * 0.8):
            return tk
    return 128


def _resident_vmem_bytes(K_pad, C_pad, tm=256):
    # Conservative: the constant-index weight/bias are counted as if
    # double-buffered (pl.Buffered(1) would reclaim that, but we budget for 2x
    # so the layout is safe even without single-buffering).
    return (2 * tm * K_pad * 4           # x f32, double-buffered
            + 2 * K_pad * C_pad * 2      # weight bf16
            + 2 * C_pad * 4              # bias f32
            + 2 * tm * C_pad * 4)        # out f32


# ---------------------------------------------------------------------------
# Kernels
# ---------------------------------------------------------------------------

def _encoder_kernel_resident(x_ref, w_ref, b_ref, o_ref):
    # Whole (K_pad, C_pad) weight is VMEM-resident (constant index_map):
    # one MXU pass per row tile, no accumulator scratch, no pl.when branches.
    acc = jnp.dot(x_ref[...].astype(jnp.bfloat16), w_ref[...],
                  preferred_element_type=jnp.float32)
    o_ref[...] = jnp.maximum(acc + b_ref[...], 0.0)


def _encoder_kernel_ktiled(x_ref, w_ref, b_ref, o_ref):
    # Fallback for very large K: accumulate directly into the resident f32
    # output block (out index_map ignores k); bias+ReLU applied on last step.
    k = pl.program_id(1)

    @pl.when(k == 0)
    def _():
        o_ref[...] = jnp.zeros_like(o_ref)

    o_ref[...] += jnp.dot(x_ref[...].astype(jnp.bfloat16), w_ref[...],
                          preferred_element_type=jnp.float32)

    @pl.when(k == pl.num_programs(1) - 1)
    def _():
        o_ref[...] = jnp.maximum(o_ref[...] + b_ref[...], 0.0)


# ---------------------------------------------------------------------------
# Host wrapper
# ---------------------------------------------------------------------------

def encoder_forward(x_gray, w_bf16, b_f32, *, resident, tk, vmem_limit):
    """x_gray: (BT, K) float; w_bf16: (K_pad, C_pad) bf16; b_f32: (1, C_pad) f32.

    Returns (BT_pad, C_pad) f32; caller slices back to (BT, C)."""
    BT, K = x_gray.shape
    K_pad, C_pad = w_bf16.shape

    tm = _choose_tm(BT)
    BT_pad = _round_up(BT, tm)

    x = x_gray.astype(jnp.float32)
    if BT_pad != BT or K_pad != K:
        # Only the ragged remainder is padded; no bf16 copy of x in HBM.
        x = jnp.pad(x, ((0, BT_pad - BT), (0, K_pad - K)))

    if resident:
        return pl.pallas_call(
            _encoder_kernel_resident,
            out_shape=jax.ShapeDtypeStruct((BT_pad, C_pad), jnp.float32),
            grid_spec=pltpu.PrefetchScalarGridSpec(
                num_scalar_prefetch=0,
                grid=(BT_pad // tm,),
                in_specs=[
                    pl.BlockSpec((tm, K_pad), lambda i: (i, 0)),       # x row tile
                    pl.BlockSpec((K_pad, C_pad), lambda i: (0, 0)),    # weight (resident)
                    pl.BlockSpec((1, C_pad), lambda i: (0, 0)),        # bias (resident)
                ],
                out_specs=pl.BlockSpec((tm, C_pad), lambda i: (i, 0)),
            ),
            compiler_params=pltpu.CompilerParams(
                dimension_semantics=("parallel",),
                vmem_limit_bytes=vmem_limit,
            ),
        )(x, w_bf16, b_f32)

    # K-tiled fallback (weight too large for VMEM residency).
    # TODO(synk): add a "parallel" C/N grid axis once C_pad >= ~1024 to bound
    # the (tk, C_pad)/(tm, C_pad) blocks and give v7x a second megacore axis.
    return pl.pallas_call(
        _encoder_kernel_ktiled,
        out_shape=jax.ShapeDtypeStruct((BT_pad, C_pad), jnp.float32),
        grid_spec=pltpu.PrefetchScalarGridSpec(
            num_scalar_prefetch=0,
            grid=(BT_pad // tm, K_pad // tk),
            in_specs=[
                pl.BlockSpec((tm, tk), lambda i, k: (i, k)),       # x tile
                pl.BlockSpec((tk, C_pad), lambda i, k: (k, 0)),    # weight K-slab
                pl.BlockSpec((1, C_pad), lambda i, k: (0, 0)),     # bias
            ],
            out_specs=pl.BlockSpec((tm, C_pad), lambda i, k: (i, 0)),
        ),
        compiler_params=pltpu.CompilerParams(
            dimension_semantics=("parallel", "arbitrary"),
            vmem_limit_bytes=vmem_limit,
        ),
    )(x, w_bf16, b_f32)


class SimpleImageEncoderShimPallas:
    """JAX/Pallas port of SimpleImageEncoderShim with a synthetic linear encoder."""

    def __init__(self, C, H, W, key, force_tiled=False):
        # TODO(synk): the reference module receives an arbitrary `image_encoder`;
        # here we deterministically synthesize a linear+ReLU encoder with output dim C.
        self.C, self.H, self.W = C, H, W
        HW = H * W
        K_full = 3 * HW
        k_w, k_b = jax.random.split(key)
        w = (jax.random.normal(k_w, (K_full, C), dtype=jnp.float32)
             / jnp.sqrt(jnp.float32(K_full)))
        b = 0.01 * jax.random.normal(k_b, (1, C), dtype=jnp.float32)
        self.w_full = w      # f32 originals, kept only for the reference check
        self.b_full = b

        # The shim always feeds three identical channel copies, so the channel
        # replication folds exactly into the first linear layer:
        #   concat([x, x, x]) @ W == x @ (W[:HW] + W[HW:2HW] + W[2HW:])
        w_fold = w[0:HW] + w[HW:2 * HW] + w[2 * HW:3 * HW]        # (HW, C)

        self.C_pad = _round_up(max(C, 128), 128)                  # lane-dense output
        self.vmem_limit = _vmem_limit_bytes()

        self.resident = (not force_tiled) and (
            _resident_vmem_bytes(_round_up(HW, 128), self.C_pad)
            <= int(self.vmem_limit * 0.8))
        if self.resident:
            self.tk = None
            K_pad = _round_up(HW, 128)
        else:
            self.tk = _choose_tk(HW, self.C_pad, self.vmem_limit)
            K_pad = _round_up(HW, self.tk)
        self.K_pad = K_pad

        w_p = jnp.zeros((K_pad, self.C_pad), jnp.float32)
        w_p = w_p.at[:HW, :C].set(w_fold)
        self.w_enc = w_p.astype(jnp.bfloat16)                     # bf16 weight in HBM
        self.b_enc = jnp.zeros((1, self.C_pad), jnp.float32).at[:, :C].set(b)
        self.output_size = C

    def reset(self):
        pass

    def __call__(self, obs, simulation_mode=False):
        if simulation_mode:
            assert obs.ndim == 2
            H, W = obs.shape
            x = obs.reshape(1, H * W).astype(jnp.float32)   # grayscale flatten, no 3x copy
            y = encoder_forward(x, self.w_enc, self.b_enc,
                                resident=self.resident, tk=self.tk,
                                vmem_limit=self.vmem_limit)
            return y[0, :self.C]                             # (C,)
        else:
            assert obs.ndim == 3
            BT, H, W = obs.shape
            x = obs.reshape(BT, H * W).astype(jnp.float32)
            y = encoder_forward(x, self.w_enc, self.b_enc,
                                resident=self.resident, tk=self.tk,
                                vmem_limit=self.vmem_limit)
            return y[:BT, :self.C]                           # (BT, C)


if __name__ == "__main__":
    key = jax.random.PRNGKey(0)
    k_params, k_obs, k_params2, k_obs2 = jax.random.split(key, 4)

    # ---- main test: resident-weight path -------------------------------
    BT, H, W, C = 8, 16, 16, 32
    shim = SimpleImageEncoderShimPallas(C=C, H=H, W=W, key=k_params)

    obs = jax.random.uniform(k_obs, (BT, H, W), dtype=jnp.float32)
    y = jax.block_until_ready(shim(obs, simulation_mode=False))
    assert y.shape == (BT, C), y.shape

    y_sim = jax.block_until_ready(shim(obs[0], simulation_mode=True))
    assert y_sim.shape == (C,), y_sim.shape

    # Pure-JAX f32 reference of the ORIGINAL (unfolded, 3-channel-expanded) formula.
    x_rep = jnp.broadcast_to(obs.reshape(1, BT, 1, H, W),
                             (1, BT, 3, H, W)).reshape(BT, 3 * H * W)
    y_ref = jnp.maximum(x_rep @ shim.w_full + shim.b_full, 0.0)
    # bf16 weights -> loosened tolerance vs the f32 reference.
    assert jnp.allclose(y, y_ref, atol=3e-2, rtol=3e-2), \
        float(jnp.max(jnp.abs(y - y_ref)))
    assert jnp.allclose(y_sim, y_ref[0], atol=3e-2, rtol=3e-2)

    # ---- secondary test: K-tiled fallback path + ragged row padding ----
    BT2 = 20
    shim2 = SimpleImageEncoderShimPallas(C=C, H=H, W=W, key=k_params2,
                                         force_tiled=True)
    obs2 = jax.random.uniform(k_obs2, (BT2, H, W), dtype=jnp.float32)
    y2 = jax.block_until_ready(shim2(obs2, simulation_mode=False))
    assert y2.shape == (BT2, C), y2.shape
    x_rep2 = jnp.broadcast_to(obs2.reshape(1, BT2, 1, H, W),
                              (1, BT2, 3, H, W)).reshape(BT2, 3 * H * W)
    y_ref2 = jnp.maximum(x_rep2 @ shim2.w_full + shim2.b_full, 0.0)
    assert jnp.allclose(y2, y_ref2, atol=3e-2, rtol=3e-2), \
        float(jnp.max(jnp.abs(y2 - y_ref2)))

    print("KERNEL_OK")
</pallas_src>

<mosaic_0001>
module attributes {stable_mosaic.version = 11 : i64} {
  func.func @_encoder_kernel_resident(%arg0: i32, %arg1: memref<8x256xf32, #tpu.memory_space<vmem>>, %arg2: memref<256x128xbf16, #tpu.memory_space<vmem>>, %arg3: memref<1x128xf32, #tpu.memory_space<vmem>>, %arg4: memref<8x128xf32, #tpu.memory_space<vmem>>) attributes {dimension_semantics = [#tpu.dimension_semantics<parallel>], iteration_bounds = array<i64: 1>, scalar_prefetch = 0 : i64, scratch_operands = 0 : i64, tpu.core_type = #tpu.core_type<tc>, window_params = [{transform_indices = @transform_0, window_bounds = array<i64: 8, 256>}, {pipeline_mode = #tpu.pipeline_mode<synchronous>, transform_indices = @transform_1, window_bounds = array<i64: 256, 128>}, {pipeline_mode = #tpu.pipeline_mode<synchronous>, transform_indices = @transform_2, window_bounds = array<i64: 1, 128>}, {transform_indices = @transform_3, window_bounds = array<i64: 8, 128>}]} {
    %c0 = arith.constant 0 : index
    %c0_0 = arith.constant 0 : index
    %0 = vector.load %arg1[%c0, %c0_0] : memref<8x256xf32, #tpu.memory_space<vmem>>, vector<8x256xf32>
    %1 = arith.truncf %0 : vector<8x256xf32> to vector<8x256xbf16>
    %c0_1 = arith.constant 0 : index
    %c0_2 = arith.constant 0 : index
    %2 = vector.load %arg2[%c0_1, %c0_2] : memref<256x128xbf16, #tpu.memory_space<vmem>>, vector<256x128xbf16>
    %cst = arith.constant dense<0.000000e+00> : vector<8x128xf32>
    %3 = tpu.matmul %1, %2, %cst {dimension_numbers = #tpu.dot_dimension_numbers<[1], [0], [0], [1], [0, 0, 1, 1], [], []>} : vector<8x256xbf16>, vector<256x128xbf16>, vector<8x128xf32> -> vector<8x128xf32>
    %c0_3 = arith.constant 0 : index
    %c0_4 = arith.constant 0 : index
    %4 = vector.load %arg3[%c0_3, %c0_4] : memref<1x128xf32, #tpu.memory_space<vmem>>, vector<1x128xf32>
    %5 = vector.broadcast %4 : vector<1x128xf32> to vector<8x128xf32>
    %6 = arith.addf %3, %5 : vector<8x128xf32>
    %cst_5 = arith.constant 0.000000e+00 : f32
    %7 = vector.broadcast %cst_5 : f32 to vector<8x128xf32>
    %8 = arith.maximumf %6, %7 : vector<8x128xf32>
    %c0_6 = arith.constant 0 : index
    %c0_7 = arith.constant 0 : index
    %9 = vector.load %arg4[%c0_6, %c0_7] : memref<8x128xf32, #tpu.memory_space<vmem>>, vector<8x128xf32>
    tpu.vector_store %arg4[%c0_6, %c0_7], %8 {strides = array<i32>} : memref<8x128xf32, #tpu.memory_space<vmem>>, vector<8x128xf32>,
    return
  }
  func.func @transform_0(%arg0: i32) -> (i32, i32) {
    %c0_i32 = arith.constant 0 : i32
    %c0_i32_0 = arith.constant 0 : i32
    return %arg0, %c0_i32 : i32, i32
  }
  func.func @transform_1(%arg0: i32) -> (i32, i32) {
    %c0_i32 = arith.constant 0 : i32
    %c0_i32_0 = arith.constant 0 : i32
    %c0_i32_1 = arith.constant 0 : i32
    return %c0_i32, %c0_i32_0 : i32, i32
  }
  func.func @transform_2(%arg0: i32) -> (i32, i32) {
    %c0_i32 = arith.constant 0 : i32
    %c0_i32_0 = arith.constant 0 : i32
    %c0_i32_1 = arith.constant 0 : i32
    return %c0_i32, %c0_i32_0 : i32, i32
  }
  func.func @transform_3(%arg0: i32) -> (i32, i32) {
    %c0_i32 = arith.constant 0 : i32
    %c0_i32_0 = arith.constant 0 : i32
    return %arg0, %c0_i32 : i32, i32
  }
}

</mosaic_0001>

<bundles_post_ra>
// kernel: tpu_custom_call.1
= control target key start
LH: loop header
LB: loop body
LE: loop exit
PB: predicated region body
PF: predicated region fallthrough
CT: control target
= control target key end

     0   :  { %8 = vsyncpa [#allocation3], 0  ;;  %s402_s0 = inlined_call_operand.hbm [shape: f32[8,256], index: 0, kind: input, shape index: {}]   ;;  %s403_s1 = inlined_call_operand.hbm [shape: bf16[256,128], index: 1, kind: input, shape index: {}]   ;;  %s404_s2 = inlined_call_operand.vmem [shape: f32[1,128], index: 2, kind: input, shape index: {}]   ;;  %s405_s3 = inlined_call_operand.hbm [shape: f32[8,128], index: 3, kind: output, shape index: {}]  }
   0x1   :  { %9 = vsyncpa [#allocation6], 0 }
   0x2   :  { %10 = vsyncpa [#allocation4], 0  ;;  %s365_s12 = smov [#allocation2]   ;;  %s366_s14 = smov [#allocation5]  }
   0x3   :  { %s17_s13 = sshll.u32 %s365_s12, 4  ;;  %s26_s15 = sshll.u32 %s366_s14, 4  ;;  %s18_s13 = int_to_ptr.vmem [resolvable:$true] %s17_s13  ;;  %s27_s15 = int_to_ptr.vmem [resolvable:$true] %s26_s15 }
   0x4   :  { %s307_s16 = scalar_lea.vmem %s18_s13, 256  ;;  %p312_p1 = scmp.lt.s32.totalorder %s18_s13, %s18_s13 }
   0x5   :  { %p308_p0 = scmp.ne.s32.totalorder %s18_s13, %s307_s16  ;;  %p313_p2 = scmp.lt.s32.totalorder %s307_s16, %s307_s16 }
   0x7   :  { %p314_p3 = por %p313_p2, %p312_p1 }
   0x9   :  { %p315_p4 = pnand %p314_p3, %p308_p0 }
   0xb   :  { %318 = shalt.err (!%p315_p4)
}
   0xc   :  { %20 = dma.hbm_to_vmem [thread:$0]  %s402_s0, 256, %s18_s13, [#allocation3]  }
   0xd   :  { %s327_s19 = scalar_lea.vmem %s27_s15, 2048  ;;  %p332_p6 = scmp.lt.s32.totalorder %s27_s15, %s27_s15 }
   0xe   :  { %p328_p5 = scmp.ne.s32.totalorder %s27_s15, %s327_s19  ;;  %p333_p7 = scmp.lt.s32.totalorder %s327_s19, %s327_s19 }
  0x10   :  { %p334_p8 = por %p333_p7, %p332_p6 }
  0x12   :  { %p335_p9 = pnand %p334_p8, %p328_p5 }
  0x14   :  { %338 = shalt.err (!%p335_p9)
}
  0x15   :  { %s367_s20 = smov 64   ;;  %s368_s21 = smov 4  }
  0x16   :  { %32 = dma.hbm_to_vmem [thread:$0]  %s403_s1, 2048, %s27_s15, [#allocation6], %s367_s20, %s367_s20, %s368_s21  }
  0x17   :  { %359 = dma.done.wait [#allocation3], 256  }
  0x18   :  { %360 = vsyncadd [#allocation3], 4294967040 }
  0x19   :  { %361 = dma.done.wait [#allocation6], 2048  }
  0x1a   :  { %362 = vsyncadd [#allocation6], 4294965248  ;;  %v283_v0 = vld [vmem:[#allocation5 + $0x78] sm:$0xff]   ;;  %v285_v2 = vld [vmem:[#allocation5 + $0x70] sm:$0xff]   ;;  %s369_s24 = smov [#allocation7]  }
  0x1b   :  { %v284_v1 = vld [vmem:[#allocation5 + $0x38] sm:$0xff]   ;;  %256 = vmatprep.subr.bf16.mxu0 %v283_v0  ;;  %v286_v3 = vld [vmem:[#allocation5 + $0x30] sm:$0xff]   ;;  %v287_v4 = vld [vmem:[#allocation5 + $0x68] sm:$0xff]   ;;  %s229_s25 = sshll.u32 %s369_s24, 4  ;;  %s230_s25 = int_to_ptr.vmem [resolvable:$true] %s229_s25 }
  0x1c   :  { %257 = vmatpush3.bf16.msra.mxu0 %v284_v1  ;;  %v288_v5 = vld [vmem:[#allocation5 + $0x28] sm:$0xff]   ;;  %v289_v6 = vld [vmem:[#allocation5 + $0x60] sm:$0xff]   ;;  %v291_v8 = vld [vmem:[#allocation5 + $0x58] sm:$0xff]   ;;  %s339_s26 = scalar_lea.vmem %s230_s25, 128  ;;  %p344_p11 = scmp.lt.s32.totalorder %s230_s25, %s230_s25 }
  0x1d   :  { %258 = vmatprep.subr.bf16.mxu0 %v285_v2  ;;  %v290_v7 = vld [vmem:[#allocation5 + $0x20] sm:$0xff]   ;;  %v292_v9 = vld [vmem:[#allocation5 + $0x18] sm:$0xff]   ;;  %v293_v10 = vld [vmem:[#allocation5 + $0x50] sm:$0xff]   ;;  %p340_p10 = scmp.ne.s32.totalorder %s230_s25, %s339_s26  ;;  %p345_p12 = scmp.lt.s32.totalorder %s339_s26, %s339_s26 }
  0x1e   :  { %v43_v11 = vld [vmem:[#allocation2 + $0x8] sm:$0xff]  ;;  %v294_v13 = vld [vmem:[#allocation5 + $0x10] sm:$0xff]   ;;  %v295_v14 = vld [vmem:[#allocation5 + $0x48] sm:$0xff]  }
  0x1f   :  { %v45_v12 = vpack.c.bf16 %v43_v11, %v43_v11  ;;  %v296_v15 = vld [vmem:[#allocation5 + $0x8] sm:$0xff]   ;;  %v297_v16 = vld [vmem:[#allocation5 + $0x40] sm:$0xff]   ;;  %v42_v18 = vld [vmem:[#allocation2] sm:$0xff]  ;;  %p346_p13 = por %p345_p12, %p344_p11 }
  0x20   :  { %259 = vmatpush3.bf16.msra.mxu0 %v286_v3  ;;  %v298_v17 = vld [vmem:[#allocation5] sm:$0xff]   ;;  %v44_v19 = vpack.c.bf16 %v42_v18, %v42_v18  ;;  %v239_v21 = vld [vmem:[%s404_s2] ss:$0 sm:$0xff] }
  0x21   :  { %260 = vmatprep.subr.bf16.mxu0 %v287_v4  ;;  %213 = vmatprep.mubr.bf16.mxu0 %v45_v12  ;;  %p347_p0 = pnand %p346_p13, %p340_p10 }
  0x24   :  { %261 = vmatpush3.bf16.msra.mxu0 %v288_v5 }
  0x25   :  { %262 = vmatprep.subr.bf16.mxu0 %v289_v6 }
  0x28   :  { %263 = vmatpush3.bf16.msra.mxu0 %v290_v7 }
  0x29   :  { %264 = vmatprep.subr.bf16.mxu0 %v291_v8 }
  0x2c   :  { %265 = vmatpush3.bf16.msra.mxu0 %v292_v9 }
  0x2d   :  { %266 = vmatprep.subr.bf16.mxu0 %v293_v10 }
  0x30   :  { %267 = vmatpush3.bf16.msra.mxu0 %v294_v13 }
  0x31   :  { %268 = vmatprep.subr.bf16.mxu0 %v295_v14 }
  0x34   :  { %269 = vmatpush3.bf16.msra.mxu0 %v296_v15 }
  0x35   :  { %270 = vmatprep.subr.bf16.mxu0 %v297_v16 }
  0x38   :  { %271 = vmatpush3.bf16.msra.mxu0 %v298_v17 }
  0x3b   :  { %214 = vmatmul.mubr.bf16.vlgmr.msra.gmra.mxu0 %v44_v19 }
  0xfb   :  { %v272_v20 = vpop.f32.mrf.mxu0 }
  0xfd   :  { %v273_v22 = vpop.f32.mrf.mxu0 }
  0xfe   :  { %v274_v23 = vadd.f32 %v273_v22, %v272_v20 }
  0xff   :  { %v275_v24 = vpop.f32.mrf.mxu0 }
 0x100   :  { %v216_v25 = vadd.f32 %v274_v23, %v239_v21 }
 0x101   :  { %v276_v26 = vpop.f32.mrf.mxu0 }
 0x102   :  { %v221_v27 = vmax.f32 %v216_v25, 0.0 }
 0x104   :  { %222 = vst [vmem:[#allocation7] sm:$0xff] %v221_v27 }
 0x105   :  { %350 = shalt.err (!%p347_p0)
}
 0x106   :  { %232 = dma.vmem_to_hbm [thread:$0]  %s230_s25, 128, %s405_s3, [#allocation4]  }
 0x107   :  { %363 = dma.done.wait [#allocation4], 128  }
 0x108   :  { %364 = vsyncadd [#allocation4], 4294967168 }
 0x109   :  { %236 = vsyncpa [#allocation3], 1 }
 0x10a   :  { %237 = vsyncpa [#allocation6], 1 }
 0x10b   :  { %238 = vsyncpa [#allocation4], 1 }

</bundles_post_ra>
